<compile_context>
chip_gen: v5e
topology: v5e:2x2
jax: 0.10.0
libtpu: 0.0.40
codegen_flags: <defaults>
</compile_context>

<pallas_src>
import functools

import jax
import jax.numpy as jnp
from jax.experimental import pallas as pl
from jax.experimental.pallas import tpu as pltpu


# --------------------------------------------------------------------------
# Kernels
# --------------------------------------------------------------------------
def _channel_sum_kernel(x_ref, sum_ref, *, n_total, hw_total):
    """Accumulate per-channel sums of x over the N and H*W axes.

    x_ref:   (TN, C, THW) block of the (N, C, H*W) input
    sum_ref: (1, C, 1) float32 accumulator (same block for every grid step)
    """
    i = pl.program_id(0)   # tile index along N
    j = pl.program_id(1)   # tile index along H*W

    @pl.when(jnp.logical_and(i == 0, j == 0))
    def _init():
        sum_ref[...] = jnp.zeros_like(sum_ref)

    tn, c, thw = x_ref.shape
    x = x_ref[...].astype(jnp.float32)

    # Mask partial boundary blocks (only traced in when tiles don't divide).
    if n_total % tn != 0:
        n_idx = i * tn + jax.lax.broadcasted_iota(jnp.int32, (tn, c, thw), 0)
        x = jnp.where(n_idx < n_total, x, 0.0)
    if hw_total % thw != 0:
        hw_idx = j * thw + jax.lax.broadcasted_iota(jnp.int32, (tn, c, thw), 2)
        x = jnp.where(hw_idx < hw_total, x, 0.0)

    s = jnp.sum(x, axis=2, keepdims=True)   # lane reduce   -> (TN, C, 1)
    s = jnp.sum(s, axis=0, keepdims=True)   # leading reduce -> (1, C, 1)
    sum_ref[...] += s


def _center_apply_kernel(x_ref, shift_ref, y_ref):
    """y = x + shift, with shift broadcast per channel.

    x_ref/y_ref: (TN, C, THW) blocks
    shift_ref:   (1, C, 1) (already in x dtype; shift = bias - mean)
    """
    y_ref[...] = x_ref[...] + shift_ref[...]


# --------------------------------------------------------------------------
# Tile selection: keep one block around ~2 MiB so 4 double-buffered buffers
# fit the default scoped-VMEM limit on every generation (v5e 16 MiB,
# v6e 32 MiB, v7x 32 MiB scoped / 64 MiB physical).
# --------------------------------------------------------------------------
def _choose_tiles(n, c, hw, itemsize, budget_bytes=2 * 1024 * 1024):
    c_pad = ((c + 7) // 8) * 8          # sublane padding of the channel axis
    plane_bytes = c_pad * itemsize      # bytes per (all-channels) lane column

    if hw <= 128 or hw * plane_bytes <= budget_bytes:
        thw = hw                        # full lane extent (always legal)
    else:
        thw = max(128, (budget_bytes // (plane_bytes * 128)) * 128)
        thw = min(thw, hw)

    block_plane = c_pad * max(thw, 128) * itemsize
    tn = max(1, budget_bytes // block_plane)
    tn = min(tn, n)
    return int(tn), int(thw)


# --------------------------------------------------------------------------
# Forward wrapper (matches CenterNorm.forward for dim=4 / NCHW input)
# --------------------------------------------------------------------------
def center_norm_forward(x_nchw, bias, running_mean, *, momentum=0.1,
                        training=True, frozen=False, affine=True):
    """CenterNorm forward.

    x_nchw:       (N, C, H, W)
    bias:         (1, C, 1, 1)   (ignored if affine=False)
    running_mean: (1, C, 1, 1)
    Returns (output_nchw, new_running_mean).
    """
    N, C, H, W = x_nchw.shape
    HW = H * W
    dtype = x_nchw.dtype
    itemsize = jnp.dtype(dtype).itemsize

    x3d = x_nchw.reshape(N, C, HW)                      # reshape only, no transpose
    tn, thw = _choose_tiles(N, C, HW, itemsize)
    grid = (pl.cdiv(N, tn), pl.cdiv(HW, thw))

    bias_f32 = (bias.reshape(1, C, 1).astype(jnp.float32)
                if affine else jnp.zeros((1, C, 1), jnp.float32))

    elem_bytes = N * C * HW * itemsize

    if training and not frozen:
        # ---- pass 1: per-channel sums -> mean ----
        ch_sum = pl.pallas_call(
            functools.partial(_channel_sum_kernel, n_total=N, hw_total=HW),
            grid=grid,
            in_specs=[pl.BlockSpec((tn, C, thw), lambda i, j: (i, 0, j))],
            out_specs=pl.BlockSpec((1, C, 1), lambda i, j: (0, 0, 0)),
            out_shape=jax.ShapeDtypeStruct((1, C, 1), jnp.float32),
            compiler_params=pltpu.CompilerParams(
                dimension_semantics=("arbitrary", "arbitrary")),
            cost_estimate=pl.CostEstimate(
                flops=N * C * HW, transcendentals=0,
                bytes_accessed=elem_bytes + 4 * C),
        )(x3d)

        mean_f32 = ch_sum * (1.0 / float(N * HW))        # (1, C, 1) f32
        mean4 = mean_f32.reshape(1, C, 1, 1)
        new_running_mean = ((1.0 - momentum) * running_mean.astype(jnp.float32)
                            + momentum * mean4).astype(running_mean.dtype)
        shift_f32 = bias_f32 - mean_f32                  # y = x + (bias - mean)
    else:
        rm_f32 = running_mean.reshape(1, C, 1).astype(jnp.float32)
        shift_f32 = bias_f32 - rm_f32                    # y = x + (bias - running_mean)
        new_running_mean = running_mean

    shift = shift_f32.astype(dtype)                      # keep elementwise math in x dtype

    # ---- pass 2: tiled elementwise centering ----
    y3d = pl.pallas_call(
        _center_apply_kernel,
        grid=grid,
        in_specs=[
            pl.BlockSpec((tn, C, thw), lambda i, j: (i, 0, j)),
            pl.BlockSpec((1, C, 1), lambda i, j: (0, 0, 0)),
        ],
        out_specs=pl.BlockSpec((tn, C, thw), lambda i, j: (i, 0, j)),
        out_shape=jax.ShapeDtypeStruct((N, C, HW), dtype),
        compiler_params=pltpu.CompilerParams(
            dimension_semantics=("parallel", "parallel")),
        cost_estimate=pl.CostEstimate(
            flops=N * C * HW, transcendentals=0,
            bytes_accessed=2 * elem_bytes),
    )(x3d, shift)

    return y3d.reshape(N, C, H, W), new_running_mean


# --------------------------------------------------------------------------
# Self-test
# --------------------------------------------------------------------------
if __name__ == "__main__":
    key = jax.random.PRNGKey(0)
    N, C, H, W = 2, 4, 16, 16
    x = jax.random.normal(key, (N, C, H, W), dtype=jnp.float32)

    # reset_parameters(): bias zeros, running_mean zeros.
    bias = jnp.zeros((1, C, 1, 1), dtype=jnp.float32)
    running_mean = jnp.zeros((1, C, 1, 1), dtype=jnp.float32)
    momentum = 0.1

    # Training-mode forward.
    y, new_rm = center_norm_forward(x, bias, running_mean,
                                    momentum=momentum, training=True)
    y = jax.block_until_ready(y)
    new_rm = jax.block_until_ready(new_rm)

    # Pure-JAX reference mirroring the PyTorch forward.
    mean_ref = jnp.mean(x, axis=(0, 2, 3), keepdims=True)
    y_ref = x - mean_ref + bias
    rm_ref = (1.0 - momentum) * running_mean + momentum * mean_ref
    assert jnp.allclose(y, y_ref, atol=1e-5, rtol=1e-5)
    assert jnp.allclose(new_rm, rm_ref, atol=1e-5, rtol=1e-5)

    # Eval / frozen path.
    y_eval, rm_eval = center_norm_forward(x, bias, rm_ref, momentum=momentum,
                                          training=False)
    y_eval = jax.block_until_ready(y_eval)
    y_eval_ref = x - rm_ref + bias
    assert jnp.allclose(y_eval, y_eval_ref, atol=1e-5, rtol=1e-5)
    assert jnp.allclose(rm_eval, rm_ref)

    print("KERNEL_OK")
</pallas_src>

<mosaic_0001>
module attributes {stable_mosaic.version = 11 : i64} {
  func.func @_channel_sum_kernel(%arg0: i32, %arg1: i32, %arg2: memref<2x4x256xf32, #tpu.memory_space<vmem>>, %arg3: memref<1x4x1xf32, #tpu.memory_space<vmem>>) attributes {dimension_semantics = [#tpu.dimension_semantics<arbitrary>, #tpu.dimension_semantics<arbitrary>], iteration_bounds = array<i64: 1, 1>, scalar_prefetch = 0 : i64, scratch_operands = 0 : i64, tpu.core_type = #tpu.core_type<tc>, window_params = [{transform_indices = @transform_0, window_bounds = array<i64: 2, 4, 256>}, {pipeline_mode = #tpu.pipeline_mode<synchronous>, transform_indices = @transform_1, window_bounds = array<i64: 1, 4, 1>}]} {
    %c0_i32 = arith.constant 0 : i32
    %0 = arith.cmpi eq, %arg0, %c0_i32 : i32
    %c0_i32_0 = arith.constant 0 : i32
    %1 = arith.cmpi eq, %arg1, %c0_i32_0 : i32
    %2 = arith.andi %0, %1 : i1
    %3 = arith.extui %2 : i1 to i32
    %c0_i32_1 = arith.constant 0 : i32
    %4 = arith.cmpi ne, %3, %c0_i32_1 : i32
    scf.if %4 {
      %cst_11 = arith.constant 0.000000e+00 : f32
      %13 = vector.broadcast %cst_11 : f32 to vector<1x4x1xf32>
      %c0_12 = arith.constant 0 : index
      %c0_13 = arith.constant 0 : index
      %c0_14 = arith.constant 0 : index
      %14 = vector.load %arg3[%c0_12, %c0_13, %c0_14] : memref<1x4x1xf32, #tpu.memory_space<vmem>>, vector<1x4x1xf32>
      tpu.vector_store %arg3[%c0_12, %c0_13, %c0_14], %13 {strides = array<i32>} : memref<1x4x1xf32, #tpu.memory_space<vmem>>, vector<1x4x1xf32>,
    } else {
    }
    %c0 = arith.constant 0 : index
    %c0_2 = arith.constant 0 : index
    %c0_3 = arith.constant 0 : index
    %5 = vector.load %arg2[%c0, %c0_2, %c0_3] : memref<2x4x256xf32, #tpu.memory_space<vmem>>, vector<2x4x256xf32>
    %cst = arith.constant dense<0.000000e+00> : vector<2x4xf32>
    %6 = vector.multi_reduction <add>, %5, %cst [2] : vector<2x4x256xf32> to vector<2x4xf32>
    %7 = vector.shape_cast %6 : vector<2x4xf32> to vector<2x4x1xf32>
    %cst_4 = arith.constant dense<0.000000e+00> : vector<4x1xf32>
    %8 = vector.multi_reduction <add>, %7, %cst_4 [0] : vector<2x4x1xf32> to vector<4x1xf32>
    %9 = vector.shape_cast %8 : vector<4x1xf32> to vector<1x4x1xf32>
    %c0_5 = arith.constant 0 : index
    %c0_6 = arith.constant 0 : index
    %c0_7 = arith.constant 0 : index
    %10 = vector.load %arg3[%c0_5, %c0_6, %c0_7] : memref<1x4x1xf32, #tpu.memory_space<vmem>>, vector<1x4x1xf32>
    %11 = arith.addf %10, %9 : vector<1x4x1xf32>
    %c0_8 = arith.constant 0 : index
    %c0_9 = arith.constant 0 : index
    %c0_10 = arith.constant 0 : index
    %12 = vector.load %arg3[%c0_8, %c0_9, %c0_10] : memref<1x4x1xf32, #tpu.memory_space<vmem>>, vector<1x4x1xf32>
    tpu.vector_store %arg3[%c0_8, %c0_9, %c0_10], %11 {strides = array<i32>} : memref<1x4x1xf32, #tpu.memory_space<vmem>>, vector<1x4x1xf32>,
    return
  }
  func.func @transform_0(%arg0: i32, %arg1: i32) -> (i32, i32, i32) {
    %c0_i32 = arith.constant 0 : i32
    %c0_i32_0 = arith.constant 0 : i32
    return %arg0, %c0_i32, %arg1 : i32, i32, i32
  }
  func.func @transform_1(%arg0: i32, %arg1: i32) -> (i32, i32, i32) {
    %c0_i32 = arith.constant 0 : i32
    %c0_i32_0 = arith.constant 0 : i32
    %c0_i32_1 = arith.constant 0 : i32
    %c0_i32_2 = arith.constant 0 : i32
    return %c0_i32, %c0_i32_0, %c0_i32_1 : i32, i32, i32
  }
}

</mosaic_0001>

<bundles_post_ra>
// kernel: tpu_custom_call.1
= control target key start
LH: loop header
LB: loop body
LE: loop exit
PB: predicated region body
PF: predicated region fallthrough
CT: control target
= control target key end

     0   :  { %6 = vsyncpa [#allocation3], 0  ;;  %s100_s9 = smov [#allocation2]   ;;  %s101_s11 = smov 128   ;;  %s132_s0 = inlined_call_operand.hbm [shape: f32[2,4,256], index: 0, kind: input, shape index: {}]   ;;  %s133_s1 = inlined_call_operand.vmem [shape: f32[1,4,1], index: 1, kind: output, shape index: {}]  }
   0x1   :  { %s11_s8 = sshll.u32 %s132_s0, 4  ;;  %s13_s10 = sshll.u32 %s100_s9, 4  ;;  %s12_s8 = int_to_ptr.hbm [resolvable:$true] %s11_s8  ;;  %s14_s10 = int_to_ptr.vmem [resolvable:$true] %s13_s10 }
   0x2   :  { %s102_s12 = smov 8  }
   0x3   :  { %19 = dma.hbm_to_vmem [thread:$0]  %s12_s8, 256, %s14_s10, [#allocation3], %s101_s11, %s101_s11, %s102_s12  }
   0x4   :  { %98 = dma.done.wait [#allocation3], 256  }
   0x5   :  { %99 = vsyncadd [#allocation3], 4294967040  ;;  %v32_v0 = vld [vmem:[#allocation2] sm:$0xff]  ;;  %v33_v1 = vld [vmem:[#allocation2 + $0x8] sm:$0xff]  ;;  %vm47_vm0 = vcmask 1043456   ;;  %vm30_vm1 = vcmask 3072  }
   0x6   :  { %36 = vst [vmem:[#allocation1] ss:$2 sm:$0xff] %v32_v0  ;;  %v103_v12 = vmov 0.0  }
   0x7   :  { %40 = vst [vmem:[#allocation1 + $0x10] ss:$2 sm:$0xff] %v33_v1 }
   0x8   :  { %31 = vst.msk [vmem:[%s133_s1] sm:$0xf] %vm30_vm1, %v103_v12 }
   0xd   :  { %v37_v2 = vld.sshfl [vmem:[#allocation1] sm:$0xff pattern:$0x75316420]  ;;  %v38_v3 = vld.sshfl [vmem:[#allocation1 + $0x8] sm:$0xff pattern:$0x75316420] }
   0xe   :  { %v48_v4 = vsel %vm47_vm0, %v37_v2, 0.0  ;;  %v49_v5 = vsel %vm47_vm0, %v38_v3, 0.0  ;;  %v41_v7 = vld.sshfl [vmem:[#allocation1 + $0x10] sm:$0xff pattern:$0x75316420] }
   0xf   :  { %v50_v6 = vadd.f32 %v49_v5, %v48_v4  ;;  %v42_v8 = vld.sshfl [vmem:[#allocation1 + $0x18] sm:$0xff pattern:$0x75316420]  ;;  %v53_v9 = vsel %vm47_vm0, %v41_v7, 0.0  ;;  %v61_v17 = vld [vmem:[%s133_s1] sm:$0xf] }
  0x10   :  { %v54_v10 = vsel %vm47_vm0, %v42_v8, 0.0 }
  0x11   :  { %51 = vadd.xlane.f32.xlu0 %v50_v6  ;;  %v55_v11 = vadd.f32 %v54_v10, %v53_v9 }
  0x19   :  { %56 = vadd.xlane.f32.xlu0 %v55_v11 }
  0x84   :  { %v52_v13 = vpop.xlane.xlu0 %51 }
  0x85   :  { %v58_v15 = vsel %vm47_vm0, %v52_v13, 0.0 }
  0x8c   :  { %v57_v14 = vpop.xlane.xlu0 %56 }
  0x8d   :  { %v59_v16 = vsel %vm47_vm0, %v57_v14, 0.0 }
  0x8e   :  { %v60_v18 = vadd.f32 %v59_v16, %v58_v15 }
  0x90   :  { %v62_v19 = vadd.f32 %v61_v17, %v60_v18 }
  0x92   :  { %64 = vst.msk [vmem:[%s133_s1] sm:$0xf] %vm30_vm1, %v62_v19 }
  0x93   :  { %69 = vsyncpa [#allocation3], 1 }

</bundles_post_ra>
